<compile_context>
chip_gen: v5e
topology: v5e:2x2
jax: 0.10.0
libtpu: 0.0.40
codegen_flags: <defaults>
</compile_context>

<pallas_src>
import functools

import jax
import jax.numpy as jnp
import numpy as np
from jax import lax
from jax.experimental import pallas as pl
from jax.experimental.pallas import tpu as pltpu


def _round_up(v: int, m: int) -> int:
    return (v + m - 1) // m * m


def _pow2_at_least(v: int, lo: int) -> int:
    v = max(int(v), int(lo))
    return 1 << (v - 1).bit_length()


_MS_BANDWIDTHS = (0.2, 0.5, 0.9, 1.3)
_RBF_BANDWIDTHS = (10.0, 15.0, 20.0, 50.0)


def _multiscale_rational_coeffs():
    """sum_a a^2/(a^2+d) == P(d)/Q(d); return Horner coeffs (high -> low)."""
    a2s = [a * a for a in _MS_BANDWIDTHS]
    q = np.poly1d([1.0])
    for a2 in a2s:
        q = q * np.poly1d([1.0, a2])
    p = np.poly1d([0.0])
    for k, a2 in enumerate(a2s):
        t = np.poly1d([a2])
        for m, b2 in enumerate(a2s):
            if m != k:
                t = t * np.poly1d([1.0, b2])
        p = p + t
    return tuple(float(c) for c in p.coeffs), tuple(float(c) for c in q.coeffs)


_MS_P, _MS_Q = _multiscale_rational_coeffs()


def _horner(d, coeffs):
    r = coeffs[0] * d + coeffs[1]
    for c in coeffs[2:]:
        r = r * d + c
    return r


def _multiscale_sum(d, approx):
    # One reciprocal per distance matrix instead of four.
    return _horner(d, _MS_P) * pl.reciprocal(_horner(d, _MS_Q), approx=approx)


def _rbf_sum(d):
    # exponents -0.5/a for a in (10,15,20,50) == -(30,20,15,6)/600.
    e = jnp.exp(d * (-1.0 / 600.0))
    e2 = e * e
    e3 = e2 * e
    e5 = e3 * e2
    e6 = e3 * e3
    e10 = e5 * e5
    e15 = e10 * e5
    e20 = e10 * e10
    e30 = e15 * e15
    return e6 + e15 + e20 + e30


def _mmd_tile_kernel(di_ref, dj_ref, ni_ref, nj_ref, o_ref, acc_ref, *,
                     kernel: str, masked: bool, clamp_nonneg: bool,
                     approx_reciprocal: bool):
    j = pl.program_id(1)
    nj_prog = pl.num_programs(1)

    xi = di_ref[0]                       # (tm, D)  (f32 or bf16)
    yi = di_ref[1]                       # (tm, D)
    dj = dj_ref[...]                     # (2, tn, D)
    _, tn, d = dj.shape
    xyj = dj.reshape(2 * tn, d)          # [xj; yj] -- layout-free merge
    yj = dj_ref[1]                       # (tn, D)

    # Gram tiles on the MXU: xx and zz in one issue, yy in a second.
    dn = (((1,), (1,)), ((), ()))
    xz = lax.dot_general(xi, xyj, dn, preferred_element_type=jnp.float32)  # (tm, 2tn)
    yy = lax.dot_general(yi, yj, dn, preferred_element_type=jnp.float32)   # (tm, tn)
    xx = xz[:, :tn]
    zz = xz[:, tn:]

    rx_i = ni_ref[0]                     # (tm, 1) f32 (precomputed in wrapper)
    ry_i = ni_ref[1]
    rx_j = nj_ref[0]                     # (1, tn) f32
    ry_j = nj_ref[1]

    dxx = rx_i + rx_j - 2.0 * xx
    dyy = ry_i + ry_j - 2.0 * yy
    dxy = rx_i + ry_j - 2.0 * zz
    if clamp_nonneg:
        # Guard against tiny negative distances from reduced-precision grams.
        dxx = jnp.maximum(dxx, 0.0)
        dyy = jnp.maximum(dyy, 0.0)
        dxy = jnp.maximum(dxy, 0.0)

    if kernel == "multiscale":
        total = (_multiscale_sum(dxx, approx_reciprocal)
                 + _multiscale_sum(dyy, approx_reciprocal)
                 - 2.0 * _multiscale_sum(dxy, approx_reciprocal))
    else:  # "rbf"
        total = _rbf_sum(dxx) + _rbf_sum(dyy) - 2.0 * _rbf_sum(dxy)

    if masked:  # static: only emitted when N was padded
        total = total * ni_ref[2] * nj_ref[2]   # valid_i (tm,1) * valid_j (1,tn)

    @pl.when(j == 0)
    def _():
        acc_ref[...] = jnp.zeros_like(acc_ref)

    acc_ref[...] += total                # plain VPU adds, hides under MXU/EUP

    @pl.when(j == nj_prog - 1)
    def _():
        s = jnp.sum(acc_ref[...], keepdims=True)           # once per i-block
        o_ref[...] = jnp.broadcast_to(s[None], (1, 8, 128))  # lane-dense write


def mmd(x: jax.Array, y: jax.Array, kernel: str = "multiscale", *,
        block_m: int = 256, block_n: int = 256,
        mxu_dtype="auto", approx_reciprocal: bool = False) -> jax.Array:
    """Pallas TPU implementation of MMD.forward.  x, y: (N, D), equal shapes."""
    if kernel not in ("multiscale", "rbf"):
        raise ValueError(f"unknown kernel: {kernel}")
    assert x.ndim == 2 and x.shape == y.shape, \
        "x and y must be 2-D with the same shape (as in the torch module)"

    n, d = x.shape
    x = x.astype(jnp.float32)
    y = y.astype(jnp.float32)

    if mxu_dtype == "auto":
        # bf16 grams are a big MXU/HBM win on v6e/v7x; keep f32 for multiscale
        # where the a^2 = 0.04 bandwidth amplifies diagonal error.
        mxu_dtype = jnp.bfloat16 if kernel == "rbf" else None

    # Tile sizes: tn lane-aligned (mult of 128), tm mult of 8, both powers of 2.
    tm = _pow2_at_least(min(block_m, n), 8)
    tn = _pow2_at_least(min(block_n, n), 128)

    # VMEM budget (D is untiled): shrink tiles if the pipeline would not fit.
    in_bytes = 2 if mxu_dtype == jnp.bfloat16 else 4
    def _vmem_est(tm_, tn_):
        data = 2 * 2 * (tm_ + tn_) * d * in_bytes      # 2 streams x 2 buffers
        norms = 2 * 3 * (tm_ + tn_) * 4
        acc = tm_ * tn_ * 4
        temps = 8 * tm_ * tn_ * 4                      # live (tm,tn) f32 temps
        return data + norms + acc + temps + 2 * 8 * 128 * 4

    budget = 24 << 20
    while _vmem_est(tm, tn) > budget and (tm > 64 or tn > 128):
        if tm >= tn and tm > 64:
            tm //= 2
        elif tn > 128:
            tn //= 2
        else:
            break

    n_pad = _round_up(n, max(tm, tn))    # powers of two => lcm == max
    # Megacore (v7x): make sure the "parallel" i axis has >= 2 blocks.
    if n_pad // tm < 2 and tm >= 16:
        tm //= 2
    gi, gj = n_pad // tm, n_pad // tn
    masked = n_pad != n
    pad = n_pad - n

    # Row norms (f32) + validity mask computed once, packed into two side inputs.
    rx = jnp.sum(x * x, axis=1)
    ry = jnp.sum(y * y, axis=1)
    valid = (jnp.arange(n_pad) < n).astype(jnp.float32)
    norms = jnp.stack([jnp.pad(rx, (0, pad)), jnp.pad(ry, (0, pad)), valid], 0)
    norms_col = norms[:, :, None]        # (3, n_pad, 1)
    norms_row = norms[:, None, :]        # (3, 1, n_pad)

    data = jnp.stack([x, y], axis=0)     # (2, n, d)
    if pad:
        data = jnp.pad(data, ((0, 0), (0, pad), (0, 0)))
    if mxu_dtype is not None:
        data = data.astype(mxu_dtype)    # bf16 tiles: half the DMA / VMEM

    kern = functools.partial(
        _mmd_tile_kernel, kernel=kernel, masked=masked,
        clamp_nonneg=(mxu_dtype is not None),
        approx_reciprocal=approx_reciprocal)

    partials = pl.pallas_call(
        kern,
        out_shape=jax.ShapeDtypeStruct((gi, 8, 128), jnp.float32),
        grid_spec=pltpu.PrefetchScalarGridSpec(
            num_scalar_prefetch=0,
            grid=(gi, gj),
            in_specs=[
                pl.BlockSpec((2, tm, d), lambda i, j: (0, i, 0)),   # [x;y] rows i
                pl.BlockSpec((2, tn, d), lambda i, j: (0, j, 0)),   # [x;y] rows j
                pl.BlockSpec((3, tm, 1), lambda i, j: (0, i, 0)),   # norms/valid i
                pl.BlockSpec((3, 1, tn), lambda i, j: (0, 0, j)),   # norms/valid j
            ],
            out_specs=pl.BlockSpec((1, 8, 128), lambda i, j: (i, 0, 0)),
            scratch_shapes=[pltpu.VMEM((tm, tn), jnp.float32)],
        ),
        compiler_params=pltpu.CompilerParams(
            dimension_semantics=("parallel", "arbitrary"),
            vmem_limit_bytes=min(64 << 20, max(32 << 20, 4 * _vmem_est(tm, tn))),
        ),
    )(data, data, norms_col, norms_row)

    return jnp.sum(partials[:, 0, 0]) / float(n * n)


def _mmd_ref(x, y, kernel="multiscale"):
    """Pure-JAX reference matching the torch module exactly."""
    xx, yy, zz = x @ x.T, y @ y.T, x @ y.T
    rx = jnp.diag(xx)[None, :]
    ry = jnp.diag(yy)[None, :]
    dxx = rx.T + rx - 2.0 * xx
    dyy = ry.T + ry - 2.0 * yy
    dxy = rx.T + ry - 2.0 * zz
    XX = jnp.zeros_like(xx)
    YY = jnp.zeros_like(xx)
    XY = jnp.zeros_like(xx)
    if kernel == "multiscale":
        for a in _MS_BANDWIDTHS:
            XX += a ** 2 * (a ** 2 + dxx) ** (-1)
            YY += a ** 2 * (a ** 2 + dyy) ** (-1)
            XY += a ** 2 * (a ** 2 + dxy) ** (-1)
    else:
        for a in _RBF_BANDWIDTHS:
            XX += jnp.exp(-0.5 * dxx / a)
            YY += jnp.exp(-0.5 * dyy / a)
            XY += jnp.exp(-0.5 * dxy / a)
    return jnp.mean(XX + YY - 2.0 * XY)


if __name__ == "__main__":
    key = jax.random.PRNGKey(0)
    kx, ky = jax.random.split(key)
    ok = True

    def _check(tag, got, want, tol):
        global ok
        if not np.allclose(np.asarray(got), np.asarray(want), rtol=tol, atol=tol):
            ok = False
            print(f"MISMATCH {tag}: got {got}, want {want}")

    # Case 1: small single-row-block problem (typical module usage).
    N, D = 8, 32
    x = jax.random.normal(kx, (N, D), dtype=jnp.float32)
    y = jax.random.normal(ky, (N, D), dtype=jnp.float32) + 0.5
    _check("multiscale N=8",
           jax.block_until_ready(mmd(x, y, kernel="multiscale")),
           jax.block_until_ready(_mmd_ref(x, y, kernel="multiscale")), 5e-3)
    _check("rbf(bf16 grams) N=8",
           jax.block_until_ready(mmd(x, y, kernel="rbf")),
           jax.block_until_ready(_mmd_ref(x, y, kernel="rbf")), 2e-2)
    _check("rbf(f32 grams) N=8",
           jax.block_until_ready(mmd(x, y, kernel="rbf", mxu_dtype=None)),
           jax.block_until_ready(_mmd_ref(x, y, kernel="rbf")), 5e-3)

    # Case 2: padded / masked multi-row-block grid (N not tile multiple).
    N2, D2 = 100, 48
    x2 = jax.random.normal(kx, (N2, D2), dtype=jnp.float32)
    y2 = jax.random.normal(ky, (N2, D2), dtype=jnp.float32) + 0.3
    _check("multiscale N=100 tiled",
           jax.block_until_ready(mmd(x2, y2, kernel="multiscale",
                                     block_m=32, block_n=32)),
           jax.block_until_ready(_mmd_ref(x2, y2, kernel="multiscale")), 5e-3)

    # Case 3: multi-block reduction axis (gj > 1) with padding, both kernels.
    N3, D3 = 200, 16
    x3 = jax.random.normal(kx, (N3, D3), dtype=jnp.float32)
    y3 = jax.random.normal(ky, (N3, D3), dtype=jnp.float32) + 0.3
    _check("multiscale N=200 gj>1",
           jax.block_until_ready(mmd(x3, y3, kernel="multiscale",
                                     block_m=64, block_n=128)),
           jax.block_until_ready(_mmd_ref(x3, y3, kernel="multiscale")), 5e-3)
    _check("rbf(bf16 grams) N=200 gj>1",
           jax.block_until_ready(mmd(x3, y3, kernel="rbf",
                                     block_m=64, block_n=128)),
           jax.block_until_ready(_mmd_ref(x3, y3, kernel="rbf")), 2e-2)

    if ok:
        print("KERNEL_OK")
</pallas_src>

<mosaic_0001>
module attributes {stable_mosaic.version = 11 : i64} {
  func.func @_mmd_tile_kernel(%arg0: i32, %arg1: i32, %arg2: memref<2x8x32xf32, #tpu.memory_space<vmem>>, %arg3: memref<2x128x32xf32, #tpu.memory_space<vmem>>, %arg4: memref<3x8x1xf32, #tpu.memory_space<vmem>>, %arg5: memref<3x1x128xf32, #tpu.memory_space<vmem>>, %arg6: memref<1x8x128xf32, #tpu.memory_space<vmem>>, %arg7: memref<8x128xf32, #tpu.memory_space<vmem>>) attributes {dimension_semantics = [#tpu.dimension_semantics<parallel>, #tpu.dimension_semantics<arbitrary>], iteration_bounds = array<i64: 16, 1>, scalar_prefetch = 0 : i64, scratch_operands = 1 : i64, tpu.core_type = #tpu.core_type<tc>, window_params = [{transform_indices = @transform_0, window_bounds = array<i64: 2, 8, 32>}, {transform_indices = @transform_1, window_bounds = array<i64: 2, 128, 32>}, {transform_indices = @transform_2, window_bounds = array<i64: 3, 8, 1>}, {transform_indices = @transform_3, window_bounds = array<i64: 3, 1, 128>}, {transform_indices = @transform_4, window_bounds = array<i64: 1, 8, 128>}]} {
    %c0 = arith.constant 0 : index
    %c0_0 = arith.constant 0 : index
    %c0_1 = arith.constant 0 : index
    %0 = vector.load %arg2[%c0, %c0_0, %c0_1] : memref<2x8x32xf32, #tpu.memory_space<vmem>>, vector<1x8x32xf32>
    %1 = vector.shape_cast %0 : vector<1x8x32xf32> to vector<8x32xf32>
    %c1 = arith.constant 1 : index
    %c0_2 = arith.constant 0 : index
    %c0_3 = arith.constant 0 : index
    %2 = vector.load %arg2[%c1, %c0_2, %c0_3] : memref<2x8x32xf32, #tpu.memory_space<vmem>>, vector<1x8x32xf32>
    %3 = vector.shape_cast %2 : vector<1x8x32xf32> to vector<8x32xf32>
    %c0_4 = arith.constant 0 : index
    %c0_5 = arith.constant 0 : index
    %c0_6 = arith.constant 0 : index
    %4 = vector.load %arg3[%c0_4, %c0_5, %c0_6] : memref<2x128x32xf32, #tpu.memory_space<vmem>>, vector<2x128x32xf32>
    %5 = vector.shape_cast %4 : vector<2x128x32xf32> to vector<256x32xf32>
    %c1_7 = arith.constant 1 : index
    %c0_8 = arith.constant 0 : index
    %c0_9 = arith.constant 0 : index
    %6 = vector.load %arg3[%c1_7, %c0_8, %c0_9] : memref<2x128x32xf32, #tpu.memory_space<vmem>>, vector<1x128x32xf32>
    %7 = vector.shape_cast %6 : vector<1x128x32xf32> to vector<128x32xf32>
    %cst = arith.constant dense<0.000000e+00> : vector<8x256xf32>
    %8 = tpu.matmul %1, %5, %cst {dimension_numbers = #tpu.dot_dimension_numbers<[1], [1], [0], [0], [0, 0, 1, 0], [], []>} : vector<8x32xf32>, vector<256x32xf32>, vector<8x256xf32> -> vector<8x256xf32>
    %cst_10 = arith.constant dense<0.000000e+00> : vector<8x128xf32>
    %9 = tpu.matmul %3, %7, %cst_10 {dimension_numbers = #tpu.dot_dimension_numbers<[1], [1], [0], [0], [0, 0, 1, 0], [], []>} : vector<8x32xf32>, vector<128x32xf32>, vector<8x128xf32> -> vector<8x128xf32>
    %10 = vector.extract_strided_slice %8 {offsets = [0, 0], sizes = [8, 128], strides = [1, 1]} : vector<8x256xf32> to vector<8x128xf32>
    %11 = vector.extract_strided_slice %8 {offsets = [0, 128], sizes = [8, 128], strides = [1, 1]} : vector<8x256xf32> to vector<8x128xf32>
    %c0_11 = arith.constant 0 : index
    %c0_12 = arith.constant 0 : index
    %c0_13 = arith.constant 0 : index
    %12 = vector.load %arg4[%c0_11, %c0_12, %c0_13] : memref<3x8x1xf32, #tpu.memory_space<vmem>>, vector<1x8x1xf32>
    %13 = vector.shape_cast %12 : vector<1x8x1xf32> to vector<8x1xf32>
    %c1_14 = arith.constant 1 : index
    %c0_15 = arith.constant 0 : index
    %c0_16 = arith.constant 0 : index
    %14 = vector.load %arg4[%c1_14, %c0_15, %c0_16] : memref<3x8x1xf32, #tpu.memory_space<vmem>>, vector<1x8x1xf32>
    %15 = vector.shape_cast %14 : vector<1x8x1xf32> to vector<8x1xf32>
    %c0_17 = arith.constant 0 : index
    %c0_18 = arith.constant 0 : index
    %c0_19 = arith.constant 0 : index
    %16 = vector.load %arg5[%c0_17, %c0_18, %c0_19] : memref<3x1x128xf32, #tpu.memory_space<vmem>>, vector<1x1x128xf32>
    %17 = vector.shape_cast %16 : vector<1x1x128xf32> to vector<1x128xf32>
    %c1_20 = arith.constant 1 : index
    %c0_21 = arith.constant 0 : index
    %c0_22 = arith.constant 0 : index
    %18 = vector.load %arg5[%c1_20, %c0_21, %c0_22] : memref<3x1x128xf32, #tpu.memory_space<vmem>>, vector<1x1x128xf32>
    %19 = vector.shape_cast %18 : vector<1x1x128xf32> to vector<1x128xf32>
    %20 = vector.broadcast %13 : vector<8x1xf32> to vector<8x128xf32>
    %21 = vector.broadcast %17 : vector<1x128xf32> to vector<8x128xf32>
    %22 = arith.addf %20, %21 : vector<8x128xf32>
    %cst_23 = arith.constant 2.000000e+00 : f32
    %23 = vector.broadcast %cst_23 : f32 to vector<8x128xf32>
    %24 = arith.mulf %23, %10 : vector<8x128xf32>
    %25 = arith.subf %22, %24 : vector<8x128xf32>
    %26 = vector.broadcast %15 : vector<8x1xf32> to vector<8x128xf32>
    %27 = vector.broadcast %19 : vector<1x128xf32> to vector<8x128xf32>
    %28 = arith.addf %26, %27 : vector<8x128xf32>
    %cst_24 = arith.constant 2.000000e+00 : f32
    %29 = vector.broadcast %cst_24 : f32 to vector<8x128xf32>
    %30 = arith.mulf %29, %9 : vector<8x128xf32>
    %31 = arith.subf %28, %30 : vector<8x128xf32>
    %32 = vector.broadcast %13 : vector<8x1xf32> to vector<8x128xf32>
    %33 = vector.broadcast %19 : vector<1x128xf32> to vector<8x128xf32>
    %34 = arith.addf %32, %33 : vector<8x128xf32>
    %cst_25 = arith.constant 2.000000e+00 : f32
    %35 = vector.broadcast %cst_25 : f32 to vector<8x128xf32>
    %36 = arith.mulf %35, %11 : vector<8x128xf32>
    %37 = arith.subf %34, %36 : vector<8x128xf32>
    %cst_26 = arith.constant 2.790000e+00 : f32
    %38 = vector.broadcast %cst_26 : f32 to vector<8x128xf32>
    %39 = arith.mulf %38, %25 : vector<8x128xf32>
    %cst_27 = arith.constant 4.207800e+00 : f32
    %40 = vector.broadcast %cst_27 : f32 to vector<8x128xf32>
    %41 = arith.addf %39, %40 : vector<8x128xf32>
    %42 = arith.mulf %41, %25 : vector<8x128xf32>
    %cst_28 = arith.constant 1.26594305 : f32
    %43 = vector.broadcast %cst_28 : f32 to vector<8x128xf32>
    %44 = arith.addf %42, %43 : vector<8x128xf32>
    %45 = arith.mulf %44, %25 : vector<8x128xf32>
    %cst_29 = arith.constant 5.475600e-02 : f32
    %46 = vector.broadcast %cst_29 : f32 to vector<8x128xf32>
    %47 = arith.addf %45, %46 : vector<8x128xf32>
    %cst_30 = arith.constant 1.000000e+00 : f32
    %48 = vector.broadcast %cst_30 : f32 to vector<8x128xf32>
    %49 = arith.mulf %48, %25 : vector<8x128xf32>
    %cst_31 = arith.constant 2.790000e+00 : f32
    %50 = vector.broadcast %cst_31 : f32 to vector<8x128xf32>
    %51 = arith.addf %49, %50 : vector<8x128xf32>
    %52 = arith.mulf %51, %25 : vector<8x128xf32>
    %cst_32 = arith.constant 2.103900e+00 : f32
    %53 = vector.broadcast %cst_32 : f32 to vector<8x128xf32>
    %54 = arith.addf %52, %53 : vector<8x128xf32>
    %55 = arith.mulf %54, %25 : vector<8x128xf32>
    %cst_33 = arith.constant 4.219810e-01 : f32
    %56 = vector.broadcast %cst_33 : f32 to vector<8x128xf32>
    %57 = arith.addf %55, %56 : vector<8x128xf32>
    %58 = arith.mulf %57, %25 : vector<8x128xf32>
    %cst_34 = arith.constant 1.368900e-02 : f32
    %59 = vector.broadcast %cst_34 : f32 to vector<8x128xf32>
    %60 = arith.addf %58, %59 : vector<8x128xf32>
    %61 = tpu.reciprocal %60 : vector<8x128xf32> -> vector<8x128xf32>
    %62 = arith.mulf %47, %61 : vector<8x128xf32>
    %cst_35 = arith.constant 2.790000e+00 : f32
    %63 = vector.broadcast %cst_35 : f32 to vector<8x128xf32>
    %64 = arith.mulf %63, %31 : vector<8x128xf32>
    %cst_36 = arith.constant 4.207800e+00 : f32
    %65 = vector.broadcast %cst_36 : f32 to vector<8x128xf32>
    %66 = arith.addf %64, %65 : vector<8x128xf32>
    %67 = arith.mulf %66, %31 : vector<8x128xf32>
    %cst_37 = arith.constant 1.26594305 : f32
    %68 = vector.broadcast %cst_37 : f32 to vector<8x128xf32>
    %69 = arith.addf %67, %68 : vector<8x128xf32>
    %70 = arith.mulf %69, %31 : vector<8x128xf32>
    %cst_38 = arith.constant 5.475600e-02 : f32
    %71 = vector.broadcast %cst_38 : f32 to vector<8x128xf32>
    %72 = arith.addf %70, %71 : vector<8x128xf32>
    %cst_39 = arith.constant 1.000000e+00 : f32
    %73 = vector.broadcast %cst_39 : f32 to vector<8x128xf32>
    %74 = arith.mulf %73, %31 : vector<8x128xf32>
    %cst_40 = arith.constant 2.790000e+00 : f32
    %75 = vector.broadcast %cst_40 : f32 to vector<8x128xf32>
    %76 = arith.addf %74, %75 : vector<8x128xf32>
    %77 = arith.mulf %76, %31 : vector<8x128xf32>
    %cst_41 = arith.constant 2.103900e+00 : f32
    %78 = vector.broadcast %cst_41 : f32 to vector<8x128xf32>
    %79 = arith.addf %77, %78 : vector<8x128xf32>
    %80 = arith.mulf %79, %31 : vector<8x128xf32>
    %cst_42 = arith.constant 4.219810e-01 : f32
    %81 = vector.broadcast %cst_42 : f32 to vector<8x128xf32>
    %82 = arith.addf %80, %81 : vector<8x128xf32>
    %83 = arith.mulf %82, %31 : vector<8x128xf32>
    %cst_43 = arith.constant 1.368900e-02 : f32
    %84 = vector.broadcast %cst_43 : f32 to vector<8x128xf32>
    %85 = arith.addf %83, %84 : vector<8x128xf32>
    %86 = tpu.reciprocal %85 : vector<8x128xf32> -> vector<8x128xf32>
    %87 = arith.mulf %72, %86 : vector<8x128xf32>
    %88 = arith.addf %62, %87 : vector<8x128xf32>
    %cst_44 = arith.constant 2.790000e+00 : f32
    %89 = vector.broadcast %cst_44 : f32 to vector<8x128xf32>
    %90 = arith.mulf %89, %37 : vector<8x128xf32>
    %cst_45 = arith.constant 4.207800e+00 : f32
    %91 = vector.broadcast %cst_45 : f32 to vector<8x128xf32>
    %92 = arith.addf %90, %91 : vector<8x128xf32>
    %93 = arith.mulf %92, %37 : vector<8x128xf32>
    %cst_46 = arith.constant 1.26594305 : f32
    %94 = vector.broadcast %cst_46 : f32 to vector<8x128xf32>
    %95 = arith.addf %93, %94 : vector<8x128xf32>
    %96 = arith.mulf %95, %37 : vector<8x128xf32>
    %cst_47 = arith.constant 5.475600e-02 : f32
    %97 = vector.broadcast %cst_47 : f32 to vector<8x128xf32>
    %98 = arith.addf %96, %97 : vector<8x128xf32>
    %cst_48 = arith.constant 1.000000e+00 : f32
    %99 = vector.broadcast %cst_48 : f32 to vector<8x128xf32>
    %100 = arith.mulf %99, %37 : vector<8x128xf32>
    %cst_49 = arith.constant 2.790000e+00 : f32
    %101 = vector.broadcast %cst_49 : f32 to vector<8x128xf32>
    %102 = arith.addf %100, %101 : vector<8x128xf32>
    %103 = arith.mulf %102, %37 : vector<8x128xf32>
    %cst_50 = arith.constant 2.103900e+00 : f32
    %104 = vector.broadcast %cst_50 : f32 to vector<8x128xf32>
    %105 = arith.addf %103, %104 : vector<8x128xf32>
    %106 = arith.mulf %105, %37 : vector<8x128xf32>
    %cst_51 = arith.constant 4.219810e-01 : f32
    %107 = vector.broadcast %cst_51 : f32 to vector<8x128xf32>
    %108 = arith.addf %106, %107 : vector<8x128xf32>
    %109 = arith.mulf %108, %37 : vector<8x128xf32>
    %cst_52 = arith.constant 1.368900e-02 : f32
    %110 = vector.broadcast %cst_52 : f32 to vector<8x128xf32>
    %111 = arith.addf %109, %110 : vector<8x128xf32>
    %112 = tpu.reciprocal %111 : vector<8x128xf32> -> vector<8x128xf32>
    %113 = arith.mulf %98, %112 : vector<8x128xf32>
    %cst_53 = arith.constant 2.000000e+00 : f32
    %114 = vector.broadcast %cst_53 : f32 to vector<8x128xf32>
    %115 = arith.mulf %114, %113 : vector<8x128xf32>
    %116 = arith.subf %88, %115 : vector<8x128xf32>
    %c2 = arith.constant 2 : index
    %c0_54 = arith.constant 0 : index
    %c0_55 = arith.constant 0 : index
    %117 = vector.load %arg4[%c2, %c0_54, %c0_55] : memref<3x8x1xf32, #tpu.memory_space<vmem>>, vector<1x8x1xf32>
    %118 = vector.shape_cast %117 : vector<1x8x1xf32> to vector<8x1xf32>
    %119 = vector.broadcast %118 : vector<8x1xf32> to vector<8x128xf32>
    %120 = arith.mulf %116, %119 : vector<8x128xf32>
    %c2_56 = arith.constant 2 : index
    %c0_57 = arith.constant 0 : index
    %c0_58 = arith.constant 0 : index
    %121 = vector.load %arg5[%c2_56, %c0_57, %c0_58] : memref<3x1x128xf32, #tpu.memory_space<vmem>>, vector<1x1x128xf32>
    %122 = vector.shape_cast %121 : vector<1x1x128xf32> to vector<1x128xf32>
    %123 = vector.broadcast %122 : vector<1x128xf32> to vector<8x128xf32>
    %124 = arith.mulf %120, %123 : vector<8x128xf32>
    %c0_i32 = arith.constant 0 : i32
    %125 = arith.cmpi eq, %arg1, %c0_i32 : i32
    %126 = arith.extui %125 : i1 to i32
    %c0_i32_59 = arith.constant 0 : i32
    %127 = arith.cmpi ne, %126, %c0_i32_59 : i32
    scf.if %127 {
      %cst_66 = arith.constant 0.000000e+00 : f32
      %134 = vector.broadcast %cst_66 : f32 to vector<8x128xf32>
      %c0_67 = arith.constant 0 : index
      %c0_68 = arith.constant 0 : index
      %135 = vector.load %arg7[%c0_67, %c0_68] : memref<8x128xf32, #tpu.memory_space<vmem>>, vector<8x128xf32>
      tpu.vector_store %arg7[%c0_67, %c0_68], %134 {strides = array<i32>} : memref<8x128xf32, #tpu.memory_space<vmem>>, vector<8x128xf32>,
    } else {
    }
    %c0_60 = arith.constant 0 : index
    %c0_61 = arith.constant 0 : index
    %128 = vector.load %arg7[%c0_60, %c0_61] : memref<8x128xf32, #tpu.memory_space<vmem>>, vector<8x128xf32>
    %129 = arith.addf %128, %124 : vector<8x128xf32>
    %c0_62 = arith.constant 0 : index
    %c0_63 = arith.constant 0 : index
    %130 = vector.load %arg7[%c0_62, %c0_63] : memref<8x128xf32, #tpu.memory_space<vmem>>, vector<8x128xf32>
    tpu.vector_store %arg7[%c0_62, %c0_63], %129 {strides = array<i32>} : memref<8x128xf32, #tpu.memory_space<vmem>>, vector<8x128xf32>,
    %c0_i32_64 = arith.constant 0 : i32
    %131 = arith.cmpi eq, %arg1, %c0_i32_64 : i32
    %132 = arith.extui %131 : i1 to i32
    %c0_i32_65 = arith.constant 0 : i32
    %133 = arith.cmpi ne, %132, %c0_i32_65 : i32
    scf.if %133 {
      %c0_66 = arith.constant 0 : index
      %c0_67 = arith.constant 0 : index
      %134 = vector.load %arg7[%c0_66, %c0_67] : memref<8x128xf32, #tpu.memory_space<vmem>>, vector<8x128xf32>
      %135 = vector.shape_cast %134 : vector<8x128xf32> to vector<1x8x128xf32>
      %cst_68 = arith.constant dense<0.000000e+00> : vector<1xf32>
      %136 = vector.multi_reduction <add>, %135, %cst_68 [1, 2] : vector<1x8x128xf32> to vector<1xf32>
      %137 = vector.shape_cast %136 : vector<1xf32> to vector<1x1x1xf32>
      %138 = vector.extract %137[0, 0, 0] : f32 from vector<1x1x1xf32>
      %139 = vector.broadcast %138 : f32 to vector<1x1xf32>
      %140 = vector.shape_cast %139 : vector<1x1xf32> to vector<1x1x1xf32>
      %141 = vector.shape_cast %140 : vector<1x1x1xf32> to vector<1x1x1xf32>
      %142 = vector.broadcast %141 : vector<1x1x1xf32> to vector<1x8x128xf32>
      %c0_69 = arith.constant 0 : index
      %c0_70 = arith.constant 0 : index
      %c0_71 = arith.constant 0 : index
      %143 = vector.load %arg6[%c0_69, %c0_70, %c0_71] : memref<1x8x128xf32, #tpu.memory_space<vmem>>, vector<1x8x128xf32>
      tpu.vector_store %arg6[%c0_69, %c0_70, %c0_71], %142 {strides = array<i32>} : memref<1x8x128xf32, #tpu.memory_space<vmem>>, vector<1x8x128xf32>,
    } else {
    }
    return
  }
  func.func @transform_0(%arg0: i32, %arg1: i32) -> (i32, i32, i32) {
    %c0_i32 = arith.constant 0 : i32
    %c0_i32_0 = arith.constant 0 : i32
    %c0_i32_1 = arith.constant 0 : i32
    return %c0_i32, %arg0, %c0_i32_0 : i32, i32, i32
  }
  func.func @transform_1(%arg0: i32, %arg1: i32) -> (i32, i32, i32) {
    %c0_i32 = arith.constant 0 : i32
    %c0_i32_0 = arith.constant 0 : i32
    %c0_i32_1 = arith.constant 0 : i32
    return %c0_i32, %arg1, %c0_i32_0 : i32, i32, i32
  }
  func.func @transform_2(%arg0: i32, %arg1: i32) -> (i32, i32, i32) {
    %c0_i32 = arith.constant 0 : i32
    %c0_i32_0 = arith.constant 0 : i32
    %c0_i32_1 = arith.constant 0 : i32
    return %c0_i32, %arg0, %c0_i32_0 : i32, i32, i32
  }
  func.func @transform_3(%arg0: i32, %arg1: i32) -> (i32, i32, i32) {
    %c0_i32 = arith.constant 0 : i32
    %c0_i32_0 = arith.constant 0 : i32
    %c0_i32_1 = arith.constant 0 : i32
    return %c0_i32, %c0_i32_0, %arg1 : i32, i32, i32
  }
  func.func @transform_4(%arg0: i32, %arg1: i32) -> (i32, i32, i32) {
    %c0_i32 = arith.constant 0 : i32
    %c0_i32_0 = arith.constant 0 : i32
    %c0_i32_1 = arith.constant 0 : i32
    return %arg0, %c0_i32, %c0_i32_0 : i32, i32, i32
  }
}

</mosaic_0001>

<bundles_post_ra>
// kernel: tpu_custom_call.1
= control target key start
LH: loop header
LB: loop body
LE: loop exit
PB: predicated region body
PF: predicated region fallthrough
CT: control target
= control target key end

     0   :  { %9 = vsyncpa [#allocation6], 0  ;;  %s1449_s0 = inlined_call_operand.vmem [shape: f32[2,128,32], index: 0, kind: input, shape index: {}]   ;;  %s1450_s1 = inlined_call_operand.vmem [shape: f32[2,128,32], index: 1, kind: input, shape index: {}]   ;;  %s1451_s2 = inlined_call_operand.vmem [shape: f32[3,128,1], index: 2, kind: input, shape index: {}]   ;;  %s1452_s3 = inlined_call_operand.vmem [shape: f32[3,1,128], index: 3, kind: input, shape index: {}]   ;;  %s1453_s4 = inlined_call_operand.hbm [shape: f32[16,8,128], index: 4, kind: output, shape index: {}]  }
   0x1   :  { %11 = vsyncpa [#allocation6 + $0x1], 0  ;;  %s1163_s15 = smov 0   ;;  %s1165_s16 = smov 0  }
   0x2   :  { %s1167_s17 = smov 0   ;;  %s1169_s18 = smov 0  }
   0x3   :  { %s1171_s19 = smov 0   ;;  %s1173_s20 = smov 0  }
   0x4 LB: > { %s898_s21 = sadd.s32 4294967295, %s1135_s20   ;;  %s899_s22 = sadd.s32 4294967294, %s1135_s20   ;;  %s1135_s20 = sphi %s1173_s20, %s17_s20   ;;  %s1131_s19 = sphi %s1171_s19, %s1465_s19   ;;  %s1127_s18 = sphi %s1169_s18, %s1464_s18   ;;  %s1123_s17 = sphi %s1167_s17, %s1463_s17   ;;  %s1119_s16 = sphi %s1165_s16, %s1462_s16   ;;  %s1115_s15 = sphi %s1163_s15, %s1461_s15  }
   0x5   : > { %s29_s23 = sadd.s32 1, %s1131_s19  ;;  %s36_s24 = sadd.s32 1, %s1123_s17 }
   0x6   : > { %p31_p0 = scmp.ge.s32.totalorder %s29_s23, 16  ;;  %p43_p1 = scmp.ne.s32.totalorder %s1123_s17, %s1119_s16 }
   0x7   : > { %p44_p2 = scmp.eq.s32.totalorder %s1135_s20, 0  ;;  %p151_p3 = scmp.eq.s32.totalorder %s898_s21, 15 }
   0x8   : > { %s1467_s23 = smov (%p31_p0, %s29_s23), 0  ;;  %p156_p6 = scmp.ne.s32.totalorder %s1119_s16, %s1115_s15 }
   0x9   : > { %p1202_p4 = por %p44_p2, %p43_p1  ;;  %p1206_p5 = por %p151_p3, %p43_p1 }
   0xa   : > { %s33_s27 = ssub.s32 %s1131_s19, %s1467_s23  ;;  %p157_p8 = scmp.eq.s32.totalorder %s899_s22, 15 }
   0xb   : > { %p34_p7 = scmp.eq.s32.totalorder %s33_s27, 0  ;;  %p903_p10 = scmp.ge.s32.totalorder %s1135_s20, 16 }
   0xc   : > { %p1217_p9 = por %p157_p8, %p156_p6 }
   0xd   : > { %s1215_s28 = scalar_select %p34_p7, %s1123_s17, %s36_s24  }
   0xe   : > { %188 = sbr.rel (%p903_p10) target bundleno = 32 (0x20), region = 24 }
  0x13   : > { %191 = sbr.rel (!%p1202_p4) target bundleno = 25 (0x19), region = 28  ;;  %s193_s30 = sand.u32 (%p1202_p4), 1, %s1123_s17  }
  0x14   : > { %s905_s5 = sshll.u32 (%p1202_p4), %s1131_s19, 3  ;;  %s904_s6 = sshll.u32 (%p1202_p4), %s193_s30, 4 }
  0x15   : > { %s197_s9 = scalar_lea.vmem (%p1202_p4), %s1449_s0, %s905_s5  ;;  %s195_s10 = scalar_lea.vmem (%p1202_p4), [#allocation3], %s904_s6 }
  0x16   : > { %v228_v0 = vld [vmem:[%s197_s9] sm:$0xff] (%p1202_p4) }
  0x17   : > { %v230_v1 = vld [vmem:[%s197_s9 + $0x80] sm:$0xff] (%p1202_p4)  ;;  %229 = vst [vmem:[%s195_s10] sm:$0xff] (%p1202_p4), %v228_v0 }
  0x18   : > { %231 = vst [vmem:[%s195_s10 + $0x8] sm:$0xff] %v230_v1 }
  0x19 PF: > { %237 = sbr.rel (!%p1202_p4) target bundleno = 32 (0x20), region = 66  ;;  %s239_s11 = sand.u32 (%p1202_p4), 1, %s1123_s17  }
  0x1a   : > { %s906_s12 = sshll.u32 (%p1202_p4), %s1131_s19, 3  ;;  %s986_s13 = smul.u32 (%p1202_p4), 24, %s239_s11 }
  0x1b   : > { %s243_s22 = scalar_lea.vmem (%p1202_p4), %s1451_s2, %s906_s12 }
  0x1c   : > { %v276_v2 = vld [vmem:[%s243_s22] sm:$0xff] (%p1202_p4)  ;;  %s241_s24 = scalar_lea.vmem (%p1202_p4), [#allocation4], %s986_s13 }
  0x1d   : > { %v278_v3 = vld [vmem:[%s243_s22 + $0x80] sm:$0xff] (%p1202_p4)  ;;  %277 = vst [vmem:[%s241_s24] sm:$0xff] (%p1202_p4), %v276_v2 }
  0x1e   : > { %v280_v4 = vld [vmem:[%s243_s22 + $0x100] sm:$0xff]  ;;  %279 = vst [vmem:[%s241_s24 + $0x8] sm:$0xff] %v278_v3 }
  0x1f   : > { %281 = vst [vmem:[%s241_s24 + $0x10] sm:$0xff] %v280_v4 }
  0x20 PF: > { %p907_p11 = scmp.ge.s32.totalorder %s1135_s20, 1  ;;  %p286_p12 = scmp.lt.s32.totalorder %s1135_s20, 17 }
  0x22   : > { %p287_p13 = pnand %p907_p11, %p286_p12 }
  0x23   : > { %s1299_s14 = sand.u32 (!%p287_p13), 1, %s1119_s16   ;;  %s983_s24 = sshll.u32 (!%p287_p13), %s1127_s18, 3 }
  0x24   : > { %290 = sbr.rel (%p287_p13) target bundleno = 465 (0x1d1), region = 104  ;;  %s909_s22 = sshll.u32 (!%p287_p13), %s1299_s14, 3 }
  0x25   : > { %s987_s27 = smul.u32 (!%p287_p13), 24, %s1299_s14  ;;  %s775_s30 = scalar_lea.hbm (!%p287_p13), %s1453_s4, %s983_s24 }
  0x26   : > { %s336_s5 = scalar_lea.vmem (!%p287_p13), [#allocation5], %s909_s22  ;;  %s779_s7 = sshll.u32 (!%p287_p13), %s775_s30, 4  ;;  %s780_s7 = int_to_ptr.hbm [resolvable:$true] %s779_s7 }
  0x27   : > { %s302_s8 = scalar_lea.vmem (!%p287_p13), [#allocation4], %s987_s27  ;;  %s908_s27 = sshll.u32 (!%p287_p13), %s1299_s14, 4 }
  0x28   : > { %s777_s6 = sshll.u32 (!%p287_p13), %s336_s5, 4  ;;  %s765_s9 = scalar_lea.sflag (!%p287_p13), [#allocation6], %s1299_s14  ;;  %s778_s6 = int_to_ptr.vmem [resolvable:$true] %s777_s6 }
  0x29   : > { %v364_v5 = vld [vmem:[%s1450_s1 + $0x78] sm:$0xff]  ;;  %vm398_vm0 = vcmask 261120   ;;  %v363_v7 = vld [vmem:[%s1450_s1 + $0x70] sm:$0xff]  ;;  %v362_v9 = vld [vmem:[%s1450_s1 + $0x68] sm:$0xff]  ;;  %v1137_v23 = vmov 0   ;;  %s1071_s10 = sshra.s32 %s780_s7, 4  ;;  %s1072_s10 = int_to_ptr.hbm [resolvable:$true] %s1071_s10 }
  0x2a   : > { %v380_v6 = vld [vmem:[%s1450_s1 + $0xf8] sm:$0xff]  ;;  %927 = vmatpush.xpose.msk.msra.mxu0 %vm398_vm0, %v364_v5  ;;  %v379_v8 = vld [vmem:[%s1450_s1 + $0xf0] sm:$0xff]  ;;  %v378_v10 = vld [vmem:[%s1450_s1 + $0xe8] sm:$0xff]  ;;  %1046 = vset.pattern.permute.xlu0 %v1137_v23  ;;  %s1073_s11 = scalar_lea.hbm %s1072_s10, 8  ;;  %s1077_s13 = scalar_lea.hbm %s1453_s4, 128 }
  0x2b   : > { %944 = vmatpush.xpose.msk.msra.mxu1 %vm398_vm0, %v380_v6  ;;  %961 = vmatpush.xpose.msk.msra.mxu2 %vm398_vm0, %v380_v6  ;;  %v361_v11 = vld [vmem:[%s1450_s1 + $0x60] sm:$0xff]  ;;  %v360_v13 = vld [vmem:[%s1450_s1 + $0x58] sm:$0xff]  ;;  %v359_v15 = vld [vmem:[%s1450_s1 + $0x50] sm:$0xff]  ;;  %p1074_p0 = scmp.ne.s32.totalorder %s1072_s10, %s1073_s11  ;;  %p1078_p3 = scmp.lt.s32.totalorder %s1072_s10, %s1453_s4 }
  0x2c   : > { %v377_v12 = vld [vmem:[%s1450_s1 + $0xe0] sm:$0xff]  ;;  %v376_v14 = vld [vmem:[%s1450_s1 + $0xd8] sm:$0xff]  ;;  %v375_v16 = vld [vmem:[%s1450_s1 + $0xd0] sm:$0xff]  ;;  %1047 = vset.pattern.permute.xlu1 %v1137_v23  ;;  %p1079_p4 = scmp.lt.s32.totalorder %s1077_s13, %s1073_s11 }
  0x2d   : > { %v358_v17 = vld [vmem:[%s1450_s1 + $0x48] sm:$0xff]  ;;  %v357_v19 = vld [vmem:[%s1450_s1 + $0x40] sm:$0xff]  ;;  %v356_v21 = vld [vmem:[%s1450_s1 + $0x38] sm:$0xff]  ;;  %p1075_p1 = pnand %p1074_p0, %p1206_p5 }
  0x2e   : > { %928 = vmatpush.xpose.msk.msra.mxu0 %vm398_vm0, %v363_v7  ;;  %v374_v18 = vld [vmem:[%s1450_s1 + $0xc8] sm:$0xff]  ;;  %v373_v20 = vld [vmem:[%s1450_s1 + $0xc0] sm:$0xff]  ;;  %v372_v22 = vld [vmem:[%s1450_s1 + $0xb8] sm:$0xff]  ;;  %p1080_p6 = por %p1079_p4, %p1078_p3 }
  0x2f   : > { %945 = vmatpush.xpose.msk.msra.mxu1 %vm398_vm0, %v379_v8  ;;  %962 = vmatpush.xpose.msk.msra.mxu2 %vm398_vm0, %v379_v8  ;;  %v609_v24 = vld [vmem:[%s302_s8] sm:$0xff]  ;;  %v980_v25 = vld [vmem:[%s302_s8 + $0x10] sm:$0xff]  ;;  %v978_v30 = vld [vmem:[%s302_s8 + $0x8] sm:$0xff]  ;;  %s295_s8 = scalar_lea.vmem [#allocation3], %s908_s27  ;;  %p1076_p2 = pneg %p1075_p1 }
  0x30   : > { %v355_v26 = vld [vmem:[%s1450_s1 + $0x30] sm:$0xff]  ;;  %617 = vperm.xlu0 %1046, %v609_v24   ;;  %731 = vperm.xlu1 %1047, %v980_v25   ;;  %v354_v28 = vld [vmem:[%s1450_s1 + $0x28] sm:$0xff]  ;;  %v353_v31 = vld [vmem:[%s1450_s1 + $0x20] sm:$0xff] }
  0x31   : > { %v371_v27 = vld [vmem:[%s1450_s1 + $0xb0] sm:$0xff]  ;;  %v370_v29 = vld [vmem:[%s1450_s1 + $0xa8] sm:$0xff]  ;;  %v369_v32 = vld [vmem:[%s1450_s1 + $0xa0] sm:$0xff]  ;;  %p1081_p7 = pnand %p1080_p6, %p1076_p2 }
  0x32   : > { %929 = vmatpush.xpose.msk.msra.mxu0 %vm398_vm0, %v362_v9  ;;  %v352_v33 = vld [vmem:[%s1450_s1 + $0x18] sm:$0xff]  ;;  %v351_v35 = vld [vmem:[%s1450_s1 + $0x10] sm:$0xff]  ;;  %v350_v37 = vld [vmem:[%s1450_s1 + $0x8] sm:$0xff] }
  0x33   : > { %946 = vmatpush.xpose.msk.msra.mxu1 %vm398_vm0, %v378_v10  ;;  %963 = vmatpush.xpose.msk.msra.mxu2 %vm398_vm0, %v378_v10  ;;  %v368_v34 = vld [vmem:[%s1450_s1 + $0x98] sm:$0xff]  ;;  %v367_v36 = vld [vmem:[%s1450_s1 + $0x90] sm:$0xff]  ;;  %v366_v38 = vld [vmem:[%s1450_s1 + $0x88] sm:$0xff] }
  0x34   : > { %v349_v39 = vld [vmem:[%s1450_s1] sm:$0xff]  ;;  %v910_v42 = vld [vmem:[%s295_s8 + $0x8] sm:$0xff] }
  0x35   : > { %v365_v40 = vld [vmem:[%s1450_s1 + $0x80] sm:$0xff] }
  0x36   : > { %930 = vmatpush.xpose.msk.msra.mxu0 %vm398_vm0, %v361_v11  ;;  %v346_v41 = vld [vmem:[%s295_s8] sm:$0xff] }
  0x37   : > { %947 = vmatpush.xpose.msk.msra.mxu1 %vm398_vm0, %v377_v12  ;;  %964 = vmatpush.xpose.msk.msra.mxu2 %vm398_vm0, %v377_v12  ;;  %v1048_v44 = vld [vmem:[%s1452_s3] ss:$0 sm:$0xff]  ;;  %v1049_v45 = vld [vmem:[%s1452_s3 + $0x1] ss:$0 sm:$0xff] }
  0x38   : > { %628 = vperm.xlu0 %1046, %v978_v30  }
  0x3a   : > { %931 = vmatpush.xpose.msk.msra.mxu0 %vm398_vm0, %v360_v13 }
  0x3b   : > { %948 = vmatpush.xpose.msk.msra.mxu1 %vm398_vm0, %v376_v14  ;;  %965 = vmatpush.xpose.msk.msra.mxu2 %vm398_vm0, %v376_v14 }
  0x3e   : > { %932 = vmatpush.xpose.msk.msra.mxu0 %vm398_vm0, %v359_v15 }
  0x3f   : > { %949 = vmatpush.xpose.msk.msra.mxu1 %vm398_vm0, %v375_v16  ;;  %966 = vmatpush.xpose.msk.msra.mxu2 %vm398_vm0, %v375_v16 }
  0x42   : > { %933 = vmatpush.xpose.msk.msra.mxu0 %vm398_vm0, %v358_v17 }
  0x43   : > { %950 = vmatpush.xpose.msk.msra.mxu1 %vm398_vm0, %v374_v18  ;;  %967 = vmatpush.xpose.msk.msra.mxu2 %vm398_vm0, %v374_v18 }
  0x46   : > { %934 = vmatpush.xpose.msk.msra.mxu0 %vm398_vm0, %v357_v19 }
  0x47   : > { %951 = vmatpush.xpose.msk.msra.mxu1 %vm398_vm0, %v373_v20  ;;  %968 = vmatpush.xpose.msk.msra.mxu2 %vm398_vm0, %v373_v20 }
  0x4a   : > { %935 = vmatpush.xpose.msk.msra.mxu0 %vm398_vm0, %v356_v21 }
  0x4b   : > { %952 = vmatpush.xpose.msk.msra.mxu1 %vm398_vm0, %v372_v22  ;;  %969 = vmatpush.xpose.msk.msra.mxu2 %vm398_vm0, %v372_v22 }
  0x4e   : > { %936 = vmatpush.xpose.msk.msra.mxu0 %vm398_vm0, %v355_v26 }
  0x4f   : > { %953 = vmatpush.xpose.msk.msra.mxu1 %vm398_vm0, %v371_v27  ;;  %970 = vmatpush.xpose.msk.msra.mxu2 %vm398_vm0, %v371_v27 }
  0x52   : > { %937 = vmatpush.xpose.msk.msra.mxu0 %vm398_vm0, %v354_v28 }
  0x53   : > { %954 = vmatpush.xpose.msk.msra.mxu1 %vm398_vm0, %v370_v29  ;;  %971 = vmatpush.xpose.msk.msra.mxu2 %vm398_vm0, %v370_v29 }
  0x56   : > { %938 = vmatpush.xpose.msk.msra.mxu0 %vm398_vm0, %v353_v31 }
  0x57   : > { %955 = vmatpush.xpose.msk.msra.mxu1 %vm398_vm0, %v369_v32  ;;  %972 = vmatpush.xpose.msk.msra.mxu2 %vm398_vm0, %v369_v32 }
  0x5a   : > { %939 = vmatpush.xpose.msk.msra.mxu0 %vm398_vm0, %v352_v33 }
  0x5b   : > { %956 = vmatpush.xpose.msk.msra.mxu1 %vm398_vm0, %v368_v34  ;;  %973 = vmatpush.xpose.msk.msra.mxu2 %vm398_vm0, %v368_v34 }
  0x5e   : > { %940 = vmatpush.xpose.msk.msra.mxu0 %vm398_vm0, %v351_v35 }
  0x5f   : > { %957 = vmatpush.xpose.msk.msra.mxu1 %vm398_vm0, %v367_v36  ;;  %974 = vmatpush.xpose.msk.msra.mxu2 %vm398_vm0, %v367_v36 }
  0x62   : > { %941 = vmatpush.xpose.msk.msra.mxu0 %vm398_vm0, %v350_v37 }
  0x63   : > { %958 = vmatpush.xpose.msk.msra.mxu1 %vm398_vm0, %v366_v38  ;;  %975 = vmatpush.xpose.msk.msra.mxu2 %vm398_vm0, %v366_v38 }
  0x66   : > { %942 = vmatpush.xpose.msk.msra.mxu0 %vm398_vm0, %v349_v39 }
  0x67   : > { %959 = vmatpush.xpose.msk.msra.mxu1 %vm398_vm0, %v365_v40  ;;  %976 = vmatpush.xpose.msk.msra.mxu2 %vm398_vm0, %v365_v40 }
  0x69   : > { %943 = vmatmul.msk.f32.vlgmr.msra.gmra.mxu0 %vm398_vm0, %v346_v41 }
  0x6a   : > { %960 = vmatmul.msk.f32.vlgmr.msra.gmra.mxu1 %vm398_vm0, %v346_v41  ;;  %977 = vmatmul.msk.f32.vlgmr.msra.gmra.mxu2 %vm398_vm0, %v910_v42 }
  0xa2   : > { %v618_v43 = vpop.permute.xlu0 %617 }
  0xa3   : > { %v623_v48 = vadd.f32 %v1048_v44, %v618_v43  ;;  %v637_v49 = vadd.f32 %v1049_v45, %v618_v43 }
  0xaa   : > { %v629_v54 = vpop.permute.xlu0 %628 }
  0xab   : > { %v634_v60 = vadd.f32 %v1049_v45, %v629_v54 }
  0xe6   : > { %v515_v46 = vpop.f32.mrf.mxu0 }
  0xe7   : > { %v535_v47 = vpop.f32.mrf.mxu1  ;;  %v624_v50 = vmul.f32 2.0, %v515_v46 }
  0xe8   : > { %v638_v51 = vmul.f32 2.0, %v535_v47 }
  0xe9   : > { %v625_v52 = vsub.f32 %v623_v48, %v624_v50 }
  0xea   : > { %v639_v53 = vsub.f32 %v637_v49, %v638_v51 }
  0xeb   : > { %v646_v55 = vadd.f32 2.79, %v625_v52  ;;  %v640_v12 = vmul.f32 2.79, %v625_v52 }
  0xec   : > { %v703_v56 = vadd.f32 2.79, %v639_v53  ;;  %v697_v14 = vmul.f32 2.79, %v639_v53 }
  0xed   : > { %v647_v57 = vmul.f32 %v646_v55, %v625_v52  ;;  %v606_v59 = vpop.f32.mrf.mxu2  ;;  %v641_v17 = vadd.f32 4.2078, %v640_v12 }
  0xee   : > { %v704_v58 = vmul.f32 %v703_v56, %v639_v53  ;;  %v635_v61 = vmul.f32 2.0, %v606_v59  ;;  %v698_v19 = vadd.f32 4.2078, %v697_v14 }
  0xef   : > { %v648_v62 = vadd.f32 2.1039, %v647_v57  ;;  %v642_v24 = vmul.f32 %v641_v17, %v625_v52 }
  0xf0   : > { %v705_v63 = vadd.f32 2.1039, %v704_v58  ;;  %v636_v0 = vsub.f32 %v634_v60, %v635_v61  ;;  %v699_v26 = vmul.f32 %v698_v19, %v639_v53 }
  0xf1   : > { %v649_v1 = vmul.f32 %v648_v62, %v625_v52  ;;  %v643_v31 = vadd.f32 1.265943, %v642_v24 }
  0xf2   : > { %v706_v2 = vmul.f32 %v705_v63, %v639_v53  ;;  %v674_v3 = vadd.f32 2.79, %v636_v0  ;;  %v668_v15 = vmul.f32 2.79, %v636_v0  ;;  %v700_v33 = vadd.f32 1.265943, %v699_v26 }
  0xf3   : > { %v650_v4 = vadd.f32 0.421981, %v649_v1  ;;  %v644_v42 = vmul.f32 %v643_v31, %v625_v52 }
  0xf4   : > { %v707_v5 = vadd.f32 0.421981, %v706_v2  ;;  %v675_v6 = vmul.f32 %v674_v3, %v636_v0  ;;  %v669_v20 = vadd.f32 4.2078, %v668_v15  ;;  %v701_v44 = vmul.f32 %v700_v33, %v639_v53 }
  0xf5   : > { %v651_v7 = vmul.f32 %v650_v4, %v625_v52  ;;  %v645_v60 = vadd.f32 0.054756, %v644_v42 }
  0xf6   : > { %v708_v8 = vmul.f32 %v707_v5, %v639_v53  ;;  %v676_v9 = vadd.f32 2.1039, %v675_v6  ;;  %v670_v29 = vmul.f32 %v669_v20, %v636_v0  ;;  %v702_v59 = vadd.f32 0.054756, %v701_v44 }
  0xf7   : > { %v652_v10 = vadd.f32 0.013689, %v651_v7  ;;  %v732_v7 = vpop.permute.xlu1 %731 }
  0xf8   : > { %v709_v11 = vadd.f32 0.013689, %v708_v8  ;;  %v677_v13 = vmul.f32 %v676_v9, %v636_v0  ;;  %v671_v36 = vadd.f32 1.265943, %v670_v29  ;;  %v1050_v9 = vld [vmem:[%s1452_s3 + $0x2] ss:$0 sm:$0xff] }
  0xf9   : > { %1051 = vrcp.f32 %v652_v10  ;;  %v664_v43 = vand.u32 2147483648, %v652_v10  ;;  %vm658_vm5 = vweird.f32 %v652_v10  ;;  %v662_v46 = vand.u32 2147483647, %v652_v10 }
  0xfa   : > { %v678_v16 = vadd.f32 0.421981, %v677_v13  ;;  %1053 = vrcp.f32 %v709_v11  ;;  %vm715_vm2 = vweird.f32 %v709_v11  ;;  %v719_v37 = vand.u32 2147483647, %v709_v11 }
  0xfb   : > { %v721_v38 = vand.u32 2147483648, %v709_v11  ;;  %v672_v50 = vmul.f32 %v671_v36, %v636_v0  ;;  %v665_v56 = vor.u32 1.1754944e-38, %v664_v43  ;;  %vm663_vm9 = vcmp.eq.f32.partialorder %v662_v46, 8.507059e+37 }
  0xfc   : > { %v679_v18 = vmul.f32 %v678_v16, %v636_v0  ;;  %vm720_vm7 = vcmp.eq.f32.partialorder %v719_v37, 8.507059e+37 }
  0xfd   : > { %v722_v52 = vor.u32 1.1754944e-38, %v721_v38  ;;  %v673_v63 = vadd.f32 0.054756, %v672_v50 }
  0xfe   : > { %v680_v21 = vadd.f32 0.013689, %v679_v18 }
  0xff   : > { %v1052_v22 = vpop.eup %1051 }
 0x100   : > { %v1054_v23 = vpop.eup %1053  ;;  %v654_v25 = vmul.f32 %v1052_v22, %v652_v10  ;;  %1055 = vrcp.f32 %v680_v21  ;;  %vm659_vm3 = vweird.f32 %v1052_v22  ;;  %v692_v51 = vand.u32 2147483648, %v680_v21 }
 0x101   : > { %v711_v27 = vmul.f32 %v1054_v23, %v709_v11  ;;  %vm716_vm1 = vweird.f32 %v1054_v23  ;;  %vm1402_vm6 = vmor %vm658_vm5, %vm659_vm3  ;;  %v690_v55 = vand.u32 2147483647, %v680_v21  ;;  %vm686_vm10 = vweird.f32 %v680_v21 }
 0x102   : > { %v655_v28 = vsub.f32 1.0, %v654_v25  ;;  %vm1396_vm4 = vmor %vm715_vm2, %vm716_vm1  ;;  %v693_v62 = vor.u32 1.1754944e-38, %v692_v51 }
 0x103   : > { %v712_v30 = vsub.f32 1.0, %v711_v27  ;;  %vm691_vm12 = vcmp.eq.f32.partialorder %v690_v55, 8.507059e+37 }
 0x104   : > { %v656_v32 = vmul.f32 %v1052_v22, %v655_v28 }
 0x105   : > { %v713_v34 = vmul.f32 %v1054_v23, %v712_v30 }
 0x106   : > { %v1056_v35 = vpop.eup %1055  ;;  %v657_v39 = vadd.f32 %v1052_v22, %v656_v32 }
 0x107   : > { %v682_v40 = vmul.f32 %v1056_v35, %v680_v21  ;;  %v714_v41 = vadd.f32 %v1054_v23, %v713_v34  ;;  %vm687_vm8 = vweird.f32 %v1056_v35 }
 0x108   : > { %v661_v53 = vsel %vm1402_vm6, %v1052_v22, %v657_v39  ;;  %vm688_vm11 = vmor %vm686_vm10, %vm687_vm8 }
 0x109   : > { %v683_v47 = vsub.f32 1.0, %v682_v40  ;;  %v718_v48 = vsel %vm1396_vm4, %v1054_v23, %v714_v41  ;;  %v666_v61 = vsel %vm663_vm9, %v665_v56, %v661_v53 }
 0x10a   : > { %v723_v57 = vsel %vm720_vm7, %v722_v52, %v718_v48  ;;  %v667_v3 = vmul.f32 %v666_v61, %v645_v60 }
 0x10b   : > { %v684_v54 = vmul.f32 %v1056_v35, %v683_v47  ;;  %v724_v1 = vmul.f32 %v723_v57, %v702_v59 }
 0x10d   : > { %v685_v58 = vadd.f32 %v1056_v35, %v684_v54  ;;  %v725_v6 = vmul.f32 2.0, %v724_v1 }
 0x10f   : > { %v689_v0 = vsel %vm688_vm11, %v1056_v35, %v685_v58 }
 0x110   : > { %v694_v2 = vsel %vm691_vm12, %v693_v62, %v689_v0 }
 0x111   : > { %v695_v4 = vmul.f32 %v694_v2, %v673_v63 }
 0x113   : > { %v696_v5 = vadd.f32 %v695_v4, %v667_v3 }
 0x115   : > { %v726_v8 = vsub.f32 %v696_v5, %v725_v6 }
 0x117   : > { %v734_v10 = vmul.f32 %v732_v7, %v726_v8 }
 0x119   : > { %v740_v11 = vmul.f32 %v1050_v9, %v734_v10 }
 0x11b   : > { %753 = vadd.xlane.f32.xlu1 %v740_v11 }
 0x18e   : > { %v754_v12 = vpop.xlane.xlu1 %753 }
 0x18f   : > { %v755_v13 = vrot.slane %v754_v12, 4 }
 0x191   : > { %v756_v14 = vadd.f32 %v755_v13, %v754_v12 }
 0x193   : > { %v757_v15 = vrot.slane %v756_v14, 2 }
 0x195   : > { %v758_v16 = vadd.f32 %v757_v15, %v756_v14 }
 0x197   : > { %v759_v17 = vrot.slane %v758_v16, 1 }
 0x199   : > { %v760_v18 = vadd.f32 %v759_v17, %v758_v16 }
 0x19b   : > { %988 = vpush %v760_v18 }
 0x1cc   : > { %s989_s8 = spop %988 }
 0x1cd   : > { %v762_v19 = vstv %s989_s8 }
 0x1ce   : > { %763 = vst [vmem:[%s336_s5] sm:$0xff] %v762_v19 }
 0x1cf   : > { %1084 = shalt.err (!%p1081_p7)
}
 0x1d0   : > { %990 = dma.vmem_to_hbm [thread:$0]  (%p1206_p5), %s778_s6, 128, %s780_s7, %s765_s9  }
 0x1d1 PF: > { %p996_p8 = scmp.ge.s32.totalorder %s1135_s20, 2  ;;  %s791_s14 = sand.u32 1, %s1115_s15  }
 0x1d2   : > { %s792_s24 = scalar_lea.sflag [#allocation6], %s791_s14 }
 0x1d3   : > { %p993_p10 = pnand %p996_p8, %p1217_p9 }
 0x1d5   : > { %p994_p11 = pneg %p993_p10 }
 0x1d7   : > { %1110 = dma.done.wait (%p994_p11), %s792_s24, 128  }
 0x1d8   : > { %1112 = vsyncadd (%p994_p11), %s792_s24, 4294967168  ;;  %s17_s20 = sadd.s32 1, %s1135_s20   ;;  %s1461_s15 = smov %s1119_s16 }
 0x1d9   : > { %p14_p12 = scmp.ge.s32.totalorder %s17_s20, 18   ;;  %s1462_s16 = smov %s1123_s17 }
 0x1da   : > { %s1463_s17 = smov %s1215_s28  ;;  %s1464_s18 = smov %s1131_s19 }
 0x1db   : > { %s1465_s19 = smov %s1467_s23  ;;  %16 = sbr.rel (!%p14_p12) target bundleno = 4 (0x4), region = 180 }
 0x1e0   :  { %798 = vsyncpa [#allocation6], 1 }
 0x1e1   :  { %800 = vsyncpa [#allocation6 + $0x1], 1 }

</bundles_post_ra>
